<compile_context>
chip_gen: v5e
topology: v5e:2x2
jax: 0.10.0
libtpu: 0.0.40
codegen_flags: <defaults>
</compile_context>

<pallas_src>
import functools

import jax
import jax.numpy as jnp
from jax.experimental import pallas as pl
from jax.experimental.pallas import tpu as pltpu


_TARGET_X_TILE_BYTES = 4 * 1024 * 1024      # aim for ~4 MB streamed x blocks


def _round_up(a, b):
    return (a + b - 1) // b * b


def _vmem_capacity_bytes():
    try:
        return int(pltpu.get_tpu_info().vmem_capacity_bytes)
    except Exception:
        return 64 * 1024 * 1024             # conservative (v7x-sized) fallback


def _pool_vmem_bytes(tn, d, g_pad, x_itemsize):
    """Rough per-step VMEM footprint of the pooling kernel (incl. one-hot temps)."""
    x_stream = 2 * tn * d * x_itemsize      # double-buffered node tile
    x_temps = tn * d * (x_itemsize + 2)     # masked copy + bf16 cast
    idx_stream = 2 * 8 * tn * 4             # (1, tn) i32 padded to 8 sublanes, x2 bufs
    gid_cache = g_pad * tn * 4              # cached graph-id iota scratch
    onehot = g_pad * tn * (1 + 2)           # bool compare temp + bf16 one-hot operand
    acc_out = 2 * g_pad * d * 4             # resident f32 partial-sum output block
    return x_stream + x_temps + idx_stream + gid_cache + onehot + acc_out


def _segment_sum_kernel(idx_ref, x_ref, part_ref, gid_ref, *,
                        n_nodes, tiles_per_core, needs_mask):
    """One node tile of one-hot-on-MXU segment summation.

    idx_ref  : [1, TN]  int32  graph id per node (-1 on padded nodes)
    x_ref    : [TN, D]         node features (native dtype; tail may be garbage)
    part_ref : [Gp, D]  f32    this core's partial segment sums (output accumulator)
    gid_ref  : [Gp, TN] int32  cached row-index iota (VMEM scratch)
    """
    c = pl.program_id(0)
    k = pl.program_id(1)

    @pl.when(k == 0)
    def _():
        part_ref[...] = jnp.zeros_like(part_ref)
        gid_ref[...] = jax.lax.broadcasted_iota(jnp.int32, gid_ref.shape, 0)

    x = x_ref[...]                                                   # [TN, D]
    if needs_mask:
        tn = x_ref.shape[0]
        tile = c * tiles_per_core + k
        pos = tile * tn + jax.lax.broadcasted_iota(jnp.int32, (tn, 1), 0)
        x = jnp.where(pos < n_nodes, x, 0)       # kill NaN/Inf garbage in the tail

    # TODO(synk): exploit sorted graph_index (scalar-prefetched per-tile graph
    # ranges -> local one-hot over only the graphs present in this tile) once
    # num_graphs is large enough for the one-hot matmul to leave the HBM-bound
    # regime.
    onehot = (gid_ref[...] == idx_ref[...]).astype(jnp.bfloat16)     # [Gp, TN]
    part_ref[...] += jnp.dot(onehot, x.astype(jnp.bfloat16),
                             preferred_element_type=jnp.float32)     # [Gp, D]


def _finalize_head_kernel(part_ref, inv_ref, w_ref, b_ref, out_ref):
    """Combine per-core partial sums, apply mean and the linear head."""
    pooled = jnp.sum(part_ref[...], axis=0) * inv_ref[...]           # [Gp, D] f32
    out_ref[...] = (jnp.dot(pooled, w_ref[...],
                            preferred_element_type=jnp.float32)
                    + b_ref[...]).astype(out_ref.dtype)


def gnn_head_forward(node_rep, graph_index, weight, bias,
                     num_graphs, num_tasks, num_classes,
                     task="classification", node_tile=None, num_core_splits=2):
    """pooled = global_mean_pool(node_rep, graph_index); out = pooled @ W + b."""
    n_nodes, d = node_rep.shape
    h = weight.shape[1]
    assert h == num_tasks * num_classes

    x_itemsize = jnp.dtype(node_rep.dtype).itemsize
    g_pad = _round_up(max(num_graphs, 8), 8)          # sublane-aligned graphs
    h_pad = _round_up(max(h, 128), 128)               # lane-dense head dim

    vmem_cap = _vmem_capacity_bytes()
    budget = vmem_cap * 3 // 4                        # leave compiler headroom

    # --- node-tile selection: multi-MB streamed blocks that fit the VMEM budget
    if node_tile is None:
        tn = _round_up(max(_TARGET_X_TILE_BYTES // (x_itemsize * d), 512), 128)
    else:
        tn = _round_up(max(int(node_tile), 128), 128)
    while tn > 256 and _pool_vmem_bytes(tn, d, g_pad, x_itemsize) > budget:
        tn = max(_round_up(tn // 2, 128), 256)

    if tn >= n_nodes:
        tn, num_tiles = n_nodes, 1                    # single full-extent block
    else:
        num_tiles = pl.cdiv(n_nodes, tn)
    needs_mask = (num_tiles * tn != n_nodes)          # ragged final tile?

    # Split node tiles across TensorCores (v7x has 2 per chip; on single-core
    # chips the extra split is just a cheap sequential outer loop).
    n_splits = max(1, min(int(num_core_splits), num_tiles))
    tiles_per_core = pl.cdiv(num_tiles, n_splits)
    n_grid_tiles = n_splits * tiles_per_core
    last_tile = num_tiles - 1                         # dummy tiles re-read this block

    # --- small host-side operands (node features stream uncopied) -------------
    gi = graph_index.astype(jnp.int32)
    idx2d = jnp.full((1, n_grid_tiles * tn), -1, jnp.int32).at[0, :n_nodes].set(gi)

    counts = jnp.zeros((num_graphs,), jnp.float32).at[gi].add(1.0)
    inv2d = jnp.ones((g_pad, 1), jnp.float32).at[:num_graphs, 0].set(
        1.0 / jnp.maximum(counts, 1.0))

    w_p = jnp.zeros((d, h_pad), jnp.float32).at[:, :h].set(weight.astype(jnp.float32))
    b_p = jnp.zeros((1, h_pad), jnp.float32).at[0, :h].set(bias.astype(jnp.float32))

    # --- kernel 1: streamed one-hot segment sums (per-core partials) ----------
    pool_vmem = _pool_vmem_bytes(tn, d, g_pad, x_itemsize)
    pool_limit = int(min(vmem_cap * 9 // 10, max(32 * 1024 * 1024, 2 * pool_vmem)))

    pool_kernel = functools.partial(_segment_sum_kernel, n_nodes=n_nodes,
                                    tiles_per_core=tiles_per_core,
                                    needs_mask=needs_mask)
    partial_sums = pl.pallas_call(
        pool_kernel,
        out_shape=jax.ShapeDtypeStruct((n_splits, g_pad, d), jnp.float32),
        grid_spec=pltpu.PrefetchScalarGridSpec(
            num_scalar_prefetch=0,
            grid=(n_splits, tiles_per_core),
            in_specs=[
                # graph ids (tiny, padded with -1 over the whole grid)
                pl.BlockSpec((1, tn), lambda c, k: (0, c * tiles_per_core + k)),
                # node features: unpadded; dummy tiles clamp to the last real block
                pl.BlockSpec((tn, d),
                             lambda c, k: (jnp.minimum(c * tiles_per_core + k,
                                                       last_tile), 0)),
            ],
            out_specs=pl.BlockSpec((None, g_pad, d), lambda c, k: (c, 0, 0)),
            scratch_shapes=[pltpu.VMEM((g_pad, tn), jnp.int32)],
        ),
        compiler_params=pltpu.CompilerParams(
            dimension_semantics=("parallel", "arbitrary"),
            vmem_limit_bytes=pool_limit,
        ),
    )(idx2d, node_rep)

    # --- kernel 2: combine partials, mean, linear head (lane-dense output) ----
    head_vmem = 4 * (n_splits * g_pad * d + g_pad * 128 + d * h_pad
                     + 8 * h_pad + 2 * g_pad * h_pad)
    head_limit = int(min(vmem_cap * 9 // 10, max(32 * 1024 * 1024, 4 * head_vmem)))
    out = pl.pallas_call(
        _finalize_head_kernel,
        out_shape=jax.ShapeDtypeStruct((g_pad, h_pad), jnp.float32),
        compiler_params=pltpu.CompilerParams(vmem_limit_bytes=head_limit),
    )(partial_sums, inv2d, w_p, b_p)

    out = out[:num_graphs, :h]
    if task == "classification":
        out = out.reshape(-1, num_tasks, num_classes)
    return out


def reference_forward(node_rep, graph_index, weight, bias,
                      num_graphs, num_tasks, num_classes, task="classification"):
    # Pure-JAX reference; matches the kernel's bf16 rounding of node features
    # on the MXU (accumulation stays f32, as in the kernel).
    x = node_rep.astype(jnp.bfloat16).astype(jnp.float32)
    seg_sum = jax.ops.segment_sum(x, graph_index, num_segments=num_graphs)
    counts = jax.ops.segment_sum(jnp.ones((x.shape[0],), jnp.float32),
                                 graph_index, num_segments=num_graphs)
    pooled = seg_sum / jnp.maximum(counts, 1.0)[:, None]
    out = jnp.dot(pooled, weight, precision=jax.lax.Precision.HIGHEST) + bias
    if task == "classification":
        out = out.reshape(-1, num_tasks, num_classes)
    return out


if __name__ == "__main__":
    def run_case(num_nodes, emb_dim, num_graphs, num_tasks, num_classes, node_tile):
        key = jax.random.PRNGKey(0)
        k1, k2, k3, k4 = jax.random.split(key, 4)
        head_dim = num_tasks * num_classes

        node_rep = jax.random.normal(k1, (num_nodes, emb_dim), dtype=jnp.float32)
        # nodes assigned to graphs (sorted, as in BatchGraphData; not required)
        graph_index = jnp.sort(
            jax.random.randint(k2, (num_nodes,), 0, num_graphs)).astype(jnp.int32)
        weight = (jax.random.normal(k3, (emb_dim, head_dim), dtype=jnp.float32)
                  / jnp.sqrt(emb_dim))
        bias = jax.random.normal(k4, (head_dim,), dtype=jnp.float32) * 0.01

        out = gnn_head_forward(node_rep, graph_index, weight, bias,
                               num_graphs, num_tasks, num_classes,
                               task="classification", node_tile=node_tile)
        out = jax.block_until_ready(out)

        ref = reference_forward(node_rep, graph_index, weight, bias,
                                num_graphs, num_tasks, num_classes)
        assert out.shape == (num_graphs, num_tasks, num_classes)
        err = float(jnp.max(jnp.abs(out - ref)))
        assert jnp.allclose(out, ref, atol=5e-3, rtol=5e-3), f"max abs err {err}"

    # Single full-extent node tile, one core split (auto tile selection).
    run_case(num_nodes=64, emb_dim=32, num_graphs=4,
             num_tasks=2, num_classes=3, node_tile=None)
    # Multi-tile + ragged tail + dummy tile on the 2-way core split.
    run_case(num_nodes=300, emb_dim=64, num_graphs=10,
             num_tasks=3, num_classes=4, node_tile=128)
    # More graphs, even 2-way split, ragged final tile.
    run_case(num_nodes=1000, emb_dim=96, num_graphs=37,
             num_tasks=4, num_classes=2, node_tile=256)

    print("KERNEL_OK")
</pallas_src>

<mosaic_0001>
module attributes {stable_mosaic.version = 11 : i64} {
  func.func @_segment_sum_kernel(%arg0: i32, %arg1: i32, %arg2: memref<1x64xi32, #tpu.memory_space<vmem>>, %arg3: memref<64x32xf32, #tpu.memory_space<vmem>>, %arg4: memref<1x8x32xf32, #tpu.memory_space<vmem>>, %arg5: memref<8x64xi32, #tpu.memory_space<vmem>>) attributes {dimension_semantics = [#tpu.dimension_semantics<parallel>, #tpu.dimension_semantics<arbitrary>], iteration_bounds = array<i64: 1, 1>, scalar_prefetch = 0 : i64, scratch_operands = 1 : i64, tpu.core_type = #tpu.core_type<tc>, window_params = [{transform_indices = @transform_0, window_bounds = array<i64: 1, 64>}, {transform_indices = @transform_1, window_bounds = array<i64: 64, 32>}, {transform_indices = @transform_2, window_bounds = array<i64: 1, 8, 32>}]} {
    %c0_i32 = arith.constant 0 : i32
    %0 = arith.cmpi eq, %arg1, %c0_i32 : i32
    %1 = arith.extui %0 : i1 to i32
    %c0_i32_0 = arith.constant 0 : i32
    %2 = arith.cmpi ne, %1, %c0_i32_0 : i32
    scf.if %2 {
      %cst_12 = arith.constant 0.000000e+00 : f32
      %19 = vector.broadcast %cst_12 : f32 to vector<8x32xf32>
      %c0_13 = arith.constant 0 : index
      %c0_14 = arith.constant 0 : index
      %c0_15 = arith.constant 0 : index
      %20 = vector.load %arg4[%c0_13, %c0_14, %c0_15] : memref<1x8x32xf32, #tpu.memory_space<vmem>>, vector<1x8x32xf32>
      %21 = vector.shape_cast %20 : vector<1x8x32xf32> to vector<8x32xf32>
      %22 = vector.shape_cast %19 : vector<8x32xf32> to vector<1x8x32xf32>
      tpu.vector_store %arg4[%c0_13, %c0_14, %c0_15], %22 {strides = array<i32>} : memref<1x8x32xf32, #tpu.memory_space<vmem>>, vector<1x8x32xf32>,
      %23 = tpu.iota {dimensions = array<i32: 0>} : vector<8x64xi32>
      %c0_16 = arith.constant 0 : index
      %c0_17 = arith.constant 0 : index
      %24 = vector.load %arg5[%c0_16, %c0_17] : memref<8x64xi32, #tpu.memory_space<vmem>>, vector<8x64xi32>
      tpu.vector_store %arg5[%c0_16, %c0_17], %23 {strides = array<i32>} : memref<8x64xi32, #tpu.memory_space<vmem>>, vector<8x64xi32>,
    } else {
    }
    %c0 = arith.constant 0 : index
    %c0_1 = arith.constant 0 : index
    %3 = vector.load %arg3[%c0, %c0_1] : memref<64x32xf32, #tpu.memory_space<vmem>>, vector<64x32xf32>
    %c0_2 = arith.constant 0 : index
    %c0_3 = arith.constant 0 : index
    %4 = vector.load %arg5[%c0_2, %c0_3] : memref<8x64xi32, #tpu.memory_space<vmem>>, vector<8x64xi32>
    %c0_4 = arith.constant 0 : index
    %c0_5 = arith.constant 0 : index
    %5 = vector.load %arg2[%c0_4, %c0_5] : memref<1x64xi32, #tpu.memory_space<vmem>>, vector<1x64xi32>
    %6 = vector.broadcast %5 : vector<1x64xi32> to vector<8x64xi32>
    %7 = arith.cmpi eq, %4, %6 : vector<8x64xi32>
    %8 = arith.extui %7 : vector<8x64xi1> to vector<8x64xi32>
    %9 = arith.sitofp %8 : vector<8x64xi32> to vector<8x64xf32>
    %10 = arith.truncf %9 : vector<8x64xf32> to vector<8x64xbf16>
    %c0_6 = arith.constant 0 : index
    %c0_7 = arith.constant 0 : index
    %c0_8 = arith.constant 0 : index
    %11 = vector.load %arg4[%c0_6, %c0_7, %c0_8] : memref<1x8x32xf32, #tpu.memory_space<vmem>>, vector<1x8x32xf32>
    %12 = vector.shape_cast %11 : vector<1x8x32xf32> to vector<8x32xf32>
    %13 = arith.truncf %3 : vector<64x32xf32> to vector<64x32xbf16>
    %cst = arith.constant dense<0.000000e+00> : vector<8x32xf32>
    %14 = tpu.matmul %10, %13, %cst {dimension_numbers = #tpu.dot_dimension_numbers<[1], [0], [0], [1], [0, 0, 1, 1], [], []>} : vector<8x64xbf16>, vector<64x32xbf16>, vector<8x32xf32> -> vector<8x32xf32>
    %15 = arith.addf %12, %14 : vector<8x32xf32>
    %c0_9 = arith.constant 0 : index
    %c0_10 = arith.constant 0 : index
    %c0_11 = arith.constant 0 : index
    %16 = vector.load %arg4[%c0_9, %c0_10, %c0_11] : memref<1x8x32xf32, #tpu.memory_space<vmem>>, vector<1x8x32xf32>
    %17 = vector.shape_cast %16 : vector<1x8x32xf32> to vector<8x32xf32>
    %18 = vector.shape_cast %15 : vector<8x32xf32> to vector<1x8x32xf32>
    tpu.vector_store %arg4[%c0_9, %c0_10, %c0_11], %18 {strides = array<i32>} : memref<1x8x32xf32, #tpu.memory_space<vmem>>, vector<1x8x32xf32>,
    return
  }
  func.func @transform_0(%arg0: i32, %arg1: i32) -> (i32, i32) {
    %c1_i32 = arith.constant 1 : i32
    %0 = arith.muli %arg0, %c1_i32 : i32
    %1 = arith.addi %0, %arg1 : i32
    %c0_i32 = arith.constant 0 : i32
    %c0_i32_0 = arith.constant 0 : i32
    return %c0_i32, %1 : i32, i32
  }
  func.func @transform_1(%arg0: i32, %arg1: i32) -> (i32, i32) {
    %c1_i32 = arith.constant 1 : i32
    %0 = arith.muli %arg0, %c1_i32 : i32
    %1 = arith.addi %0, %arg1 : i32
    %c0_i32 = arith.constant 0 : i32
    %2 = arith.minsi %1, %c0_i32 : i32
    %c0_i32_0 = arith.constant 0 : i32
    %c0_i32_1 = arith.constant 0 : i32
    return %2, %c0_i32_0 : i32, i32
  }
  func.func @transform_2(%arg0: i32, %arg1: i32) -> (i32, i32, i32) {
    %c0_i32 = arith.constant 0 : i32
    %c0_i32_0 = arith.constant 0 : i32
    %c0_i32_1 = arith.constant 0 : i32
    return %arg0, %c0_i32, %c0_i32_0 : i32, i32, i32
  }
}

</mosaic_0001>

<bundles_post_ra>
// kernel: tpu_custom_call.1
= control target key start
LH: loop header
LB: loop body
LE: loop exit
PB: predicated region body
PF: predicated region fallthrough
CT: control target
= control target key end

     0   :  { %vm63_vm0 = vcmask 261120   ;;  %v65_v3 = vlaneseq  ;;  %v165_v6 = vmov 0.0   ;;  %vm67_vm1 = vcmask 523264   ;;  %s216_s0 = inlined_call_operand.vmem [shape: s32[1,64], index: 0, kind: input, shape index: {}]   ;;  %s217_s1 = inlined_call_operand.vmem [shape: f32[64,32], index: 1, kind: input, shape index: {}]   ;;  %s218_s2 = inlined_call_operand.hbm [shape: f32[1,8,32], index: 2, kind: output, shape index: {}]  }
   0x1   :  { %v75_v0 = vld [vmem:[%s217_s1 + $0x30] sm:$0xff]  ;;  %v76_v1 = vld [vmem:[%s217_s1 + $0x38] sm:$0xff]  ;;  %v73_v2 = vld [vmem:[%s217_s1 + $0x20] sm:$0xff]  ;;  %64 = vst.msk [vmem:[#allocation3] sm:$0xff] %vm63_vm0, %v165_v6 }
   0x2   :  { %v88_v4 = vpack.c.bf16 %v76_v1, %v75_v0  ;;  %v74_v5 = vld [vmem:[%s217_s1 + $0x28] sm:$0xff]  ;;  %v66_v7 = vshrl.u32 %v65_v3, 7 }
   0x3   :  { %v87_v8 = vpack.c.bf16 %v74_v5, %v73_v2 }
   0x4   :  { %97 = vmatpush.bf16.msra.mxu0 %v88_v4 }
   0x5   :  { %7 = vsyncpa [#allocation4], 0  ;;  %v71_v9 = vld [vmem:[%s217_s1 + $0x10] sm:$0xff]  ;;  %v72_v10 = vld [vmem:[%s217_s1 + $0x18] sm:$0xff]  ;;  %68 = vst.msk [vmem:[#allocation2] sm:$0xff] %vm67_vm1, %v66_v7  ;;  %s166_s27 = smov [#allocation3]  }
   0x6   :  { %v86_v11 = vpack.c.bf16 %v72_v10, %v71_v9  ;;  %v69_v12 = vld [vmem:[%s217_s1] sm:$0xff]  ;;  %v70_v13 = vld [vmem:[%s217_s1 + $0x8] sm:$0xff]  ;;  %s114_s28 = sshll.u32 %s166_s27, 4  ;;  %s116_s1 = sshll.u32 %s218_s2, 4  ;;  %s115_s28 = int_to_ptr.vmem [resolvable:$true] %s114_s28  ;;  %s117_s1 = int_to_ptr.hbm [resolvable:$true] %s116_s1 }
   0x7   :  { %v138_v14 = vld [vmem:[%s216_s0] ss:$0 sm:$0xff]  ;;  %v85_v15 = vpack.c.bf16 %v70_v13, %v69_v12 }
   0x8   :  { %98 = vmatpush.bf16.msra.mxu0 %v87_v8  ;;  %v84_v19 = vld [vmem:[#allocation3] sm:$0xff] }
   0xc   :  { %99 = vmatpush.bf16.msra.mxu0 %v86_v11  ;;  %v77_v16 = vld [vmem:[#allocation2] sm:$0xff] }
   0xd   :  { %vm80_vm2 = vcmp.eq.s32.totalorder %v77_v16, %v138_v14 }
   0xe   :  { %v134_v17 = vsel %vm80_vm2, 1.0, %v165_v6 }
   0xf   :  { %v83_v18 = vpack.c.bf16 %v134_v17, %v134_v17 }
  0x10   :  { %100 = vmatpush.bf16.msra.mxu0 %v85_v15 }
  0x13   :  { %135 = vmatmul.msk.bf16.vlgmr.msra.gmra.mxu0 %vm67_vm1, %v83_v18 }
  0x90   :  { %v102_v20 = vpop.f32.mrf.mxu0 }
  0x91   :  { %v106_v21 = vadd.f32 %v102_v20, %v84_v19 }
  0x93   :  { %108 = vst.msk [vmem:[#allocation3] sm:$0xff] %vm63_vm0, %v106_v21 }
  0x94   :  { %119 = dma.vmem_to_hbm [thread:$0]  %s115_s28, 128, %s117_s1, [#allocation4]  }
  0x98   :  { %v104_v22 = vpop.f32.mrf.mxu0 }
  0x99   :  { %163 = dma.done.wait [#allocation4], 128  }
  0x9a   :  { %164 = vsyncadd [#allocation4], 4294967168 }
  0x9b   :  { %124 = vsyncpa [#allocation4], 1 }

</bundles_post_ra>
